<compile_context>
chip_gen: v7x
topology: tpu7x:2x2x1
jax: 0.10.0
libtpu: 0.0.40
codegen_flags: <defaults>
</compile_context>

<pallas_src>
import functools

import jax
import jax.numpy as jnp
from jax import lax
from jax.experimental import pallas as pl
from jax.experimental.pallas import tpu as pltpu


def _atthead_kernel(x_ref, top_ref, bot_ref, w1_ref, w2_ref, o_ref, xe_ref, *, W):
    """One (batch, row-tile) per grid step; channel-major, lane-flattened spatial.

    x_ref  : (1, C, T)     main tile (tile_h image rows, flattened onto lanes)
    top_ref: (1, 1, C, W)  image row directly above the tile (zeros at the top edge)
    bot_ref: (1, 1, C, W)  image row directly below the tile (zeros at the bottom edge)
    w1_ref : (C1, C)       1x1-conv weight (channel-mix matrix), resident
    w2_ref : (9, C1, 1)    depthwise 3x3 weight, one (C1,1) column per tap
                           (tap t = (ky+1)*3 + (kx+1)), resident
    o_ref  : (1, C1, T)    output tile
    xe_ref : (C, E)        f32 scratch holding the circularly-extended input tile
    """
    C = x_ref.shape[1]
    T = x_ref.shape[2]
    C1 = o_ref.shape[1]
    E = T + 2 * W                       # extended (circular) tile length

    # Circular extended tile: [ main rows | bottom-halo row | top-halo row ].
    # With this ordering the ky = +/-1 row shifts below wrap exactly onto the halo
    # rows, so no row masks are needed (image top/bottom arrive as zero rows) and the
    # stored output slice starts at lane 0 (lane-dense store).
    xe_ref[:, 0:T] = x_ref[0].astype(jnp.float32)
    xe_ref[:, T:T + W] = bot_ref[0, 0].astype(jnp.float32)
    xe_ref[:, T + W:E] = top_ref[0, 0].astype(jnp.float32)
    x_ext = xe_ref[...]                                            # (C, E)

    # ---- 1x1 conv: y[c1, q] = sum_c w1[c1, c] * x[c, q] ----------------------
    w1 = w1_ref[...]                                               # (C1, C)
    if C <= 2:
        # Degenerate contraction: cheaper as VPU broadcast MACs.
        y = w1[:, 0:1] * x_ext[0:1, :]
        for c in range(1, C):
            y = y + w1[:, c:c + 1] * x_ext[c:c + 1, :]
    else:
        # MXU path (MXU is otherwise idle); N = E stays lane-dense, f32 accumulate.
        y = jnp.dot(w1, x_ext, preferred_element_type=jnp.float32)  # (C1, E)

    # ---- depthwise 3x3, padding=1, groups=C1 ---------------------------------
    # Only two column masks are needed (generated in-kernel, no HBM mask fetch).
    col = lax.broadcasted_iota(jnp.int32, (1, E), 1) % W
    has_left = (col >= 1).astype(jnp.float32)        # a kx = -1 neighbour exists
    has_right = (col <= W - 2).astype(jnp.float32)   # a kx = +1 neighbour exists

    y_l = pltpu.roll(y, shift=1, axis=1) * has_left       # y_l[q] = y[q-1]
    y_r = pltpu.roll(y, shift=E - 1, axis=1) * has_right  # y_r[q] = y[q+1]

    def ky_partial(k):   # k = ky + 1; taps 3k+0 (kx=-1), 3k+1 (kx=0), 3k+2 (kx=+1)
        return (w2_ref[3 * k + 0] * y_l
                + w2_ref[3 * k + 1] * y
                + w2_ref[3 * k + 2] * y_r)

    out = ky_partial(1)                                          # ky = 0 (same row)
    out = out + pltpu.roll(ky_partial(0), shift=W, axis=1)       # ky = -1 (row above)
    out = out + pltpu.roll(ky_partial(2), shift=E - W, axis=1)   # ky = +1 (row below)

    o_ref[0] = out[:, :T].astype(o_ref.dtype)


def _valid_tile(tile_h, H, W):
    return (isinstance(tile_h, int) and tile_h >= 1 and H % tile_h == 0
            and (tile_h == H or (tile_h * W) % 128 == 0))


def _choose_tile_h(H, W, C, C1, budget_bytes=12 * 1024 * 1024):
    """Largest row-tile whose working set fits a modest VMEM budget, with the
    flattened tile length a multiple of 128 lanes (or the whole frame)."""
    per_lane_bytes = 4 * (3 * C + 10 * C1)   # double-buffered blocks + f32 temporaries
    max_lanes = min(max(budget_bytes // per_lane_bytes, W), 32 * 1024)
    candidates = [d for d in range(1, H + 1)
                  if H % d == 0 and (d == H or (d * W) % 128 == 0)]
    fitting = [d for d in candidates if d * W <= max_lanes]
    if fitting:
        return max(fitting)
    # Nothing fits the budget: use the smallest legal tile (still correct).
    return min(candidates)


def atthead_image(x_nchw, w1_oi, w2_dw, *, tile_h=None):
    """
    x_nchw : (B, C, H, W)
    w1_oi  : (C1, C, 1, 1)  PyTorch Conv2d(C, C1, 1, bias=False).weight
    w2_dw  : (C1, 1, 3, 3)  PyTorch Conv2d(C1, C1, 3, padding=1, groups=C1).weight
    returns: (B, C1, H, W), same dtype as x
    """
    B, C, H, W = x_nchw.shape
    C1 = w2_dw.shape[0]

    if tile_h is None or not _valid_tile(tile_h, H, W):
        tile_h = _choose_tile_h(H, W, C, C1)
    nH = H // tile_h
    T = tile_h * W
    E = T + 2 * W

    # Native NCHW consumption: only free reshapes, no transposes, no dtype copy.
    x_flat = x_nchw.reshape(B, C, H * W)

    # Small f32 weight residents.
    w1 = w1_oi[:, :, 0, 0].astype(jnp.float32)                        # (C1, C)
    w2 = jnp.transpose(w2_dw[:, 0, :, :].reshape(C1, 9), (1, 0))      # (9, C1)
    w2 = w2.reshape(9, C1, 1).astype(jnp.float32)

    # Pre-gathered halo rows, one per row-tile (zero rows at the image top/bottom
    # edges encode the conv's zero padding).  Total size: 2*nH rows = 2/tile_h of x.
    zrow = jnp.zeros((B, C, 1, W), x_nchw.dtype)
    top_rows = x_nchw[:, :, tile_h - 1::tile_h, :]        # last row of each tile
    bot_rows = x_nchw[:, :, ::tile_h, :]                  # first row of each tile
    top_halo = jnp.concatenate([zrow, top_rows[:, :, :nH - 1, :]], axis=2)
    bot_halo = jnp.concatenate([bot_rows[:, :, 1:, :], zrow], axis=2)
    top_halo = jnp.transpose(top_halo, (0, 2, 1, 3))      # (B, nH, C, W)
    bot_halo = jnp.transpose(bot_halo, (0, 2, 1, 3))      # (B, nH, C, W)

    out_dtype = x_nchw.dtype
    in_item = jnp.dtype(x_nchw.dtype).itemsize
    out_item = jnp.dtype(out_dtype).itemsize

    # Scoped-VMEM request sized from the real per-step footprint, capped well below
    # v7x's 64 MiB physical VMEM.
    per_step = (2 * (C * T + 2 * C * W) * in_item          # x blocks, double-buffered
                + 2 * C1 * T * out_item                    # out block, double-buffered
                + 4 * (C * E + 8 * C1 * E)                 # f32 scratch + temporaries
                + 4 * (C1 * C + 9 * C1 * 128))             # residents (padded)
    vmem_limit = int(min(48 * 1024 * 1024, max(32 * 1024 * 1024, 2 * per_step)))

    cost = pl.CostEstimate(
        flops=int(B * nH * (2 * C * C1 * E + 17 * C1 * E)),
        transcendentals=0,
        bytes_accessed=int(in_item * (B * C * H * W + 2 * B * nH * C * W)
                           + out_item * B * C1 * H * W
                           + 4 * (C1 * C + 9 * C1)),
    )

    out_flat = pl.pallas_call(
        functools.partial(_atthead_kernel, W=W),
        out_shape=jax.ShapeDtypeStruct((B, C1, H * W), out_dtype),
        grid_spec=pltpu.PrefetchScalarGridSpec(
            num_scalar_prefetch=0,
            grid=(B, nH),
            in_specs=[
                pl.BlockSpec((1, C, T), lambda b, i: (b, 0, i)),        # x main tile
                pl.BlockSpec((1, 1, C, W), lambda b, i: (b, i, 0, 0)),  # top halo row
                pl.BlockSpec((1, 1, C, W), lambda b, i: (b, i, 0, 0)),  # bottom halo row
                pl.BlockSpec((C1, C), lambda b, i: (0, 0)),             # w1 (resident)
                pl.BlockSpec((9, C1, 1), lambda b, i: (0, 0, 0)),       # w2 (resident)
            ],
            out_specs=pl.BlockSpec((1, C1, T), lambda b, i: (b, 0, i)),
            scratch_shapes=[pltpu.VMEM((C, E), jnp.float32)],
        ),
        compiler_params=pltpu.CompilerParams(
            dimension_semantics=("parallel", "parallel"),
            vmem_limit_bytes=vmem_limit,
        ),
        cost_estimate=cost,
    )(x_flat, top_halo, bot_halo, w1, w2)

    # Free reshape back to NCHW.
    return out_flat.reshape(B, C1, H, W)


def _reference(x_nchw, w1_oi, w2_dw):
    """Pure-JAX reference (XLA convs) for correctness checking."""
    C1 = w1_oi.shape[0]
    y = lax.conv_general_dilated(
        x_nchw, w1_oi, window_strides=(1, 1), padding="VALID",
        dimension_numbers=("NCHW", "OIHW", "NCHW"))
    z = lax.conv_general_dilated(
        y, w2_dw, window_strides=(1, 1), padding=((1, 1), (1, 1)),
        dimension_numbers=("NCHW", "OIHW", "NCHW"),
        feature_group_count=C1)
    return z


if __name__ == "__main__":
    B, C, H, W = 2, 4, 16, 16
    C1 = 8

    key = jax.random.PRNGKey(0)
    kx_, k1, k2 = jax.random.split(key, 3)
    x = jax.random.normal(kx_, (B, C, H, W), dtype=jnp.float32)
    # Deterministic synthetic parameters matching the PyTorch module's shapes.
    w1 = jax.random.normal(k1, (C1, C, 1, 1), dtype=jnp.float32) * 0.1
    w2 = jax.random.normal(k2, (C1, 1, 3, 3), dtype=jnp.float32) * 0.1

    ref = jax.block_until_ready(_reference(x, w1, w2))

    # Multi-tile path: 2 row-tiles of 8 rows each -> exercises the halo logic.
    out_tiled = jax.block_until_ready(atthead_image(x, w1, w2, tile_h=8))
    # Single-tile path: whole frame, both halos are the zero-padding rows.
    out_whole = jax.block_until_ready(atthead_image(x, w1, w2, tile_h=16))

    assert out_tiled.shape == (B, C1, H, W)
    assert out_whole.shape == (B, C1, H, W)
    err_t = float(jnp.max(jnp.abs(out_tiled - ref)))
    err_w = float(jnp.max(jnp.abs(out_whole - ref)))
    assert jnp.allclose(out_tiled, ref, atol=5e-3, rtol=5e-3), \
        f"tiled path max abs err {err_t}"
    assert jnp.allclose(out_whole, ref, atol=5e-3, rtol=5e-3), \
        f"whole-frame path max abs err {err_w}"

    print("KERNEL_OK")
</pallas_src>

<mosaic_0001>
module attributes {stable_mosaic.version = 11 : i64} {
  func.func @_atthead_kernel(%arg0: i32, %arg1: i32, %arg2: memref<1x4x128xf32, #tpu.memory_space<vmem>>, %arg3: memref<1x1x4x16xf32, #tpu.memory_space<vmem>>, %arg4: memref<1x1x4x16xf32, #tpu.memory_space<vmem>>, %arg5: memref<8x4xf32, #tpu.memory_space<vmem>>, %arg6: memref<9x8x1xf32, #tpu.memory_space<vmem>>, %arg7: memref<1x8x128xf32, #tpu.memory_space<vmem>>, %arg8: memref<4x160xf32, #tpu.memory_space<vmem>>) attributes {dimension_semantics = [#tpu.dimension_semantics<parallel>, #tpu.dimension_semantics<parallel>], iteration_bounds = array<i64: 2, 2>, scalar_prefetch = 0 : i64, scratch_operands = 1 : i64, tpu.core_type = #tpu.core_type<tc>, window_params = [{transform_indices = @transform_0, window_bounds = array<i64: 1, 4, 128>}, {transform_indices = @transform_1, window_bounds = array<i64: 1, 1, 4, 16>}, {transform_indices = @transform_2, window_bounds = array<i64: 1, 1, 4, 16>}, {pipeline_mode = #tpu.pipeline_mode<synchronous>, transform_indices = @transform_3, window_bounds = array<i64: 8, 4>}, {pipeline_mode = #tpu.pipeline_mode<synchronous>, transform_indices = @transform_4, window_bounds = array<i64: 9, 8, 1>}, {transform_indices = @transform_5, window_bounds = array<i64: 1, 8, 128>}]} {
    %c0 = arith.constant 0 : index
    %c0_0 = arith.constant 0 : index
    %c0_1 = arith.constant 0 : index
    %0 = vector.load %arg2[%c0, %c0_0, %c0_1] : memref<1x4x128xf32, #tpu.memory_space<vmem>>, vector<1x4x128xf32>
    %1 = vector.shape_cast %0 : vector<1x4x128xf32> to vector<4x128xf32>
    %c0_2 = arith.constant 0 : index
    %c0_3 = arith.constant 0 : index
    %2 = vector.load %arg8[%c0_2, %c0_3] : memref<4x160xf32, #tpu.memory_space<vmem>>, vector<4x128xf32>
    tpu.vector_store %arg8[%c0_2, %c0_3], %1 {strides = array<i32>} : memref<4x160xf32, #tpu.memory_space<vmem>>, vector<4x128xf32>,
    %c0_4 = arith.constant 0 : index
    %c0_5 = arith.constant 0 : index
    %c0_6 = arith.constant 0 : index
    %c0_7 = arith.constant 0 : index
    %3 = vector.load %arg4[%c0_4, %c0_5, %c0_6, %c0_7] : memref<1x1x4x16xf32, #tpu.memory_space<vmem>>, vector<1x1x4x16xf32>
    %4 = vector.shape_cast %3 : vector<1x1x4x16xf32> to vector<4x16xf32>
    %c0_8 = arith.constant 0 : index
    %c128 = arith.constant 128 : index
    %5 = vector.load %arg8[%c0_8, %c128] : memref<4x160xf32, #tpu.memory_space<vmem>>, vector<4x16xf32>
    tpu.vector_store %arg8[%c0_8, %c128], %4 {strides = array<i32>} : memref<4x160xf32, #tpu.memory_space<vmem>>, vector<4x16xf32>,
    %c0_9 = arith.constant 0 : index
    %c0_10 = arith.constant 0 : index
    %c0_11 = arith.constant 0 : index
    %c0_12 = arith.constant 0 : index
    %6 = vector.load %arg3[%c0_9, %c0_10, %c0_11, %c0_12] : memref<1x1x4x16xf32, #tpu.memory_space<vmem>>, vector<1x1x4x16xf32>
    %7 = vector.shape_cast %6 : vector<1x1x4x16xf32> to vector<4x16xf32>
    %c0_13 = arith.constant 0 : index
    %c144 = arith.constant 144 : index
    %8 = vector.load %arg8[%c0_13, %c144] : memref<4x160xf32, #tpu.memory_space<vmem>>, vector<4x16xf32>
    tpu.vector_store %arg8[%c0_13, %c144], %7 {strides = array<i32>} : memref<4x160xf32, #tpu.memory_space<vmem>>, vector<4x16xf32>,
    %c0_14 = arith.constant 0 : index
    %c0_15 = arith.constant 0 : index
    %9 = vector.load %arg8[%c0_14, %c0_15] : memref<4x160xf32, #tpu.memory_space<vmem>>, vector<4x160xf32>
    %c0_16 = arith.constant 0 : index
    %c0_17 = arith.constant 0 : index
    %10 = vector.load %arg5[%c0_16, %c0_17] : memref<8x4xf32, #tpu.memory_space<vmem>>, vector<8x4xf32>
    %cst = arith.constant dense<0.000000e+00> : vector<8x160xf32>
    %11 = tpu.matmul %10, %9, %cst {dimension_numbers = #tpu.dot_dimension_numbers<[1], [0], [0], [1], [0, 0, 1, 1], [], []>} : vector<8x4xf32>, vector<4x160xf32>, vector<8x160xf32> -> vector<8x160xf32>
    %12 = tpu.iota {dimensions = array<i32: 1>} : vector<1x160xi32>
    %c16_i32 = arith.constant 16 : i32
    %c0_i32 = arith.constant 0 : i32
    %13 = arith.cmpi eq, %c16_i32, %c0_i32 : i32
    %c1_i32 = arith.constant 1 : i32
    %14 = arith.select %13, %c1_i32, %c16_i32 : i32
    %15 = vector.broadcast %14 : i32 to vector<1x160xi32>
    %16 = arith.remsi %12, %15 : vector<1x160xi32>
    %c0_i32_18 = arith.constant 0 : i32
    %17 = vector.broadcast %c0_i32_18 : i32 to vector<1x160xi32>
    %18 = arith.cmpi ne, %16, %17 : vector<1x160xi32>
    %c0_i32_19 = arith.constant 0 : i32
    %19 = vector.broadcast %c0_i32_19 : i32 to vector<1x160xi32>
    %20 = arith.cmpi slt, %16, %19 : vector<1x160xi32>
    %c0_i32_20 = arith.constant 0 : i32
    %21 = arith.cmpi slt, %14, %c0_i32_20 : i32
    %22 = vector.broadcast %21 : i1 to vector<1x160xi1>
    %23 = vector.broadcast %22 : vector<1x160xi1> to vector<1x160xi1>
    %24 = arith.xori %20, %23 : vector<1x160xi1>
    %25 = arith.andi %24, %18 : vector<1x160xi1>
    %26 = vector.broadcast %14 : i32 to vector<1x160xi32>
    %27 = arith.addi %16, %26 : vector<1x160xi32>
    %28 = arith.select %25, %27, %16 : vector<1x160xi1>, vector<1x160xi32>
    %c1_i32_21 = arith.constant 1 : i32
    %29 = vector.broadcast %c1_i32_21 : i32 to vector<1x160xi32>
    %30 = arith.cmpi sge, %28, %29 : vector<1x160xi32>
    %31 = arith.extui %30 : vector<1x160xi1> to vector<1x160xi32>
    %32 = arith.sitofp %31 : vector<1x160xi32> to vector<1x160xf32>
    %c14_i32 = arith.constant 14 : i32
    %33 = vector.broadcast %c14_i32 : i32 to vector<1x160xi32>
    %34 = arith.cmpi sle, %28, %33 : vector<1x160xi32>
    %35 = arith.extui %34 : vector<1x160xi1> to vector<1x160xi32>
    %36 = arith.sitofp %35 : vector<1x160xi32> to vector<1x160xf32>
    %c1_i32_22 = arith.constant 1 : i32
    %37 = tpu.dynamic_rotate %11 by %c1_i32_22 dim 1 : vector<8x160xf32>, i32 -> vector<8x160xf32>
    %38 = vector.broadcast %32 : vector<1x160xf32> to vector<8x160xf32>
    %39 = arith.mulf %37, %38 : vector<8x160xf32>
    %c159_i32 = arith.constant 159 : i32
    %40 = tpu.dynamic_rotate %11 by %c159_i32 dim 1 : vector<8x160xf32>, i32 -> vector<8x160xf32>
    %41 = vector.broadcast %36 : vector<1x160xf32> to vector<8x160xf32>
    %42 = arith.mulf %40, %41 : vector<8x160xf32>
    %c3 = arith.constant 3 : index
    %c0_23 = arith.constant 0 : index
    %c0_24 = arith.constant 0 : index
    %43 = vector.load %arg6[%c3, %c0_23, %c0_24] : memref<9x8x1xf32, #tpu.memory_space<vmem>>, vector<1x8x1xf32>
    %44 = vector.shape_cast %43 : vector<1x8x1xf32> to vector<8x1xf32>
    %45 = vector.broadcast %44 : vector<8x1xf32> to vector<8x160xf32>
    %46 = arith.mulf %45, %39 : vector<8x160xf32>
    %c4 = arith.constant 4 : index
    %c0_25 = arith.constant 0 : index
    %c0_26 = arith.constant 0 : index
    %47 = vector.load %arg6[%c4, %c0_25, %c0_26] : memref<9x8x1xf32, #tpu.memory_space<vmem>>, vector<1x8x1xf32>
    %48 = vector.shape_cast %47 : vector<1x8x1xf32> to vector<8x1xf32>
    %49 = vector.broadcast %48 : vector<8x1xf32> to vector<8x160xf32>
    %50 = arith.mulf %49, %11 : vector<8x160xf32>
    %51 = arith.addf %46, %50 : vector<8x160xf32>
    %c5 = arith.constant 5 : index
    %c0_27 = arith.constant 0 : index
    %c0_28 = arith.constant 0 : index
    %52 = vector.load %arg6[%c5, %c0_27, %c0_28] : memref<9x8x1xf32, #tpu.memory_space<vmem>>, vector<1x8x1xf32>
    %53 = vector.shape_cast %52 : vector<1x8x1xf32> to vector<8x1xf32>
    %54 = vector.broadcast %53 : vector<8x1xf32> to vector<8x160xf32>
    %55 = arith.mulf %54, %42 : vector<8x160xf32>
    %56 = arith.addf %51, %55 : vector<8x160xf32>
    %c0_29 = arith.constant 0 : index
    %c0_30 = arith.constant 0 : index
    %c0_31 = arith.constant 0 : index
    %57 = vector.load %arg6[%c0_29, %c0_30, %c0_31] : memref<9x8x1xf32, #tpu.memory_space<vmem>>, vector<1x8x1xf32>
    %58 = vector.shape_cast %57 : vector<1x8x1xf32> to vector<8x1xf32>
    %59 = vector.broadcast %58 : vector<8x1xf32> to vector<8x160xf32>
    %60 = arith.mulf %59, %39 : vector<8x160xf32>
    %c1 = arith.constant 1 : index
    %c0_32 = arith.constant 0 : index
    %c0_33 = arith.constant 0 : index
    %61 = vector.load %arg6[%c1, %c0_32, %c0_33] : memref<9x8x1xf32, #tpu.memory_space<vmem>>, vector<1x8x1xf32>
    %62 = vector.shape_cast %61 : vector<1x8x1xf32> to vector<8x1xf32>
    %63 = vector.broadcast %62 : vector<8x1xf32> to vector<8x160xf32>
    %64 = arith.mulf %63, %11 : vector<8x160xf32>
    %65 = arith.addf %60, %64 : vector<8x160xf32>
    %c2 = arith.constant 2 : index
    %c0_34 = arith.constant 0 : index
    %c0_35 = arith.constant 0 : index
    %66 = vector.load %arg6[%c2, %c0_34, %c0_35] : memref<9x8x1xf32, #tpu.memory_space<vmem>>, vector<1x8x1xf32>
    %67 = vector.shape_cast %66 : vector<1x8x1xf32> to vector<8x1xf32>
    %68 = vector.broadcast %67 : vector<8x1xf32> to vector<8x160xf32>
    %69 = arith.mulf %68, %42 : vector<8x160xf32>
    %70 = arith.addf %65, %69 : vector<8x160xf32>
    %c16_i32_36 = arith.constant 16 : i32
    %71 = tpu.dynamic_rotate %70 by %c16_i32_36 dim 1 : vector<8x160xf32>, i32 -> vector<8x160xf32>
    %72 = arith.addf %56, %71 : vector<8x160xf32>
    %c6 = arith.constant 6 : index
    %c0_37 = arith.constant 0 : index
    %c0_38 = arith.constant 0 : index
    %73 = vector.load %arg6[%c6, %c0_37, %c0_38] : memref<9x8x1xf32, #tpu.memory_space<vmem>>, vector<1x8x1xf32>
    %74 = vector.shape_cast %73 : vector<1x8x1xf32> to vector<8x1xf32>
    %75 = vector.broadcast %74 : vector<8x1xf32> to vector<8x160xf32>
    %76 = arith.mulf %75, %39 : vector<8x160xf32>
    %c7 = arith.constant 7 : index
    %c0_39 = arith.constant 0 : index
    %c0_40 = arith.constant 0 : index
    %77 = vector.load %arg6[%c7, %c0_39, %c0_40] : memref<9x8x1xf32, #tpu.memory_space<vmem>>, vector<1x8x1xf32>
    %78 = vector.shape_cast %77 : vector<1x8x1xf32> to vector<8x1xf32>
    %79 = vector.broadcast %78 : vector<8x1xf32> to vector<8x160xf32>
    %80 = arith.mulf %79, %11 : vector<8x160xf32>
    %81 = arith.addf %76, %80 : vector<8x160xf32>
    %c8 = arith.constant 8 : index
    %c0_41 = arith.constant 0 : index
    %c0_42 = arith.constant 0 : index
    %82 = vector.load %arg6[%c8, %c0_41, %c0_42] : memref<9x8x1xf32, #tpu.memory_space<vmem>>, vector<1x8x1xf32>
    %83 = vector.shape_cast %82 : vector<1x8x1xf32> to vector<8x1xf32>
    %84 = vector.broadcast %83 : vector<8x1xf32> to vector<8x160xf32>
    %85 = arith.mulf %84, %42 : vector<8x160xf32>
    %86 = arith.addf %81, %85 : vector<8x160xf32>
    %c144_i32 = arith.constant 144 : i32
    %87 = tpu.dynamic_rotate %86 by %c144_i32 dim 1 : vector<8x160xf32>, i32 -> vector<8x160xf32>
    %88 = arith.addf %72, %87 : vector<8x160xf32>
    %89 = vector.extract_strided_slice %88 {offsets = [0, 0], sizes = [8, 128], strides = [1, 1]} : vector<8x160xf32> to vector<8x128xf32>
    %c0_43 = arith.constant 0 : index
    %c0_44 = arith.constant 0 : index
    %c0_45 = arith.constant 0 : index
    %90 = vector.load %arg7[%c0_43, %c0_44, %c0_45] : memref<1x8x128xf32, #tpu.memory_space<vmem>>, vector<1x8x128xf32>
    %91 = vector.shape_cast %90 : vector<1x8x128xf32> to vector<8x128xf32>
    %92 = vector.shape_cast %89 : vector<8x128xf32> to vector<1x8x128xf32>
    tpu.vector_store %arg7[%c0_43, %c0_44, %c0_45], %92 {strides = array<i32>} : memref<1x8x128xf32, #tpu.memory_space<vmem>>, vector<1x8x128xf32>,
    return
  }
  func.func @transform_0(%arg0: i32, %arg1: i32) -> (i32, i32, i32) {
    %c0_i32 = arith.constant 0 : i32
    %c0_i32_0 = arith.constant 0 : i32
    return %arg0, %c0_i32, %arg1 : i32, i32, i32
  }
  func.func @transform_1(%arg0: i32, %arg1: i32) -> (i32, i32, i32, i32) {
    %c0_i32 = arith.constant 0 : i32
    %c0_i32_0 = arith.constant 0 : i32
    %c0_i32_1 = arith.constant 0 : i32
    return %arg0, %arg1, %c0_i32, %c0_i32_0 : i32, i32, i32, i32
  }
  func.func @transform_2(%arg0: i32, %arg1: i32) -> (i32, i32, i32, i32) {
    %c0_i32 = arith.constant 0 : i32
    %c0_i32_0 = arith.constant 0 : i32
    %c0_i32_1 = arith.constant 0 : i32
    return %arg0, %arg1, %c0_i32, %c0_i32_0 : i32, i32, i32, i32
  }
  func.func @transform_3(%arg0: i32, %arg1: i32) -> (i32, i32) {
    %c0_i32 = arith.constant 0 : i32
    %c0_i32_0 = arith.constant 0 : i32
    %c0_i32_1 = arith.constant 0 : i32
    return %c0_i32, %c0_i32_0 : i32, i32
  }
  func.func @transform_4(%arg0: i32, %arg1: i32) -> (i32, i32, i32) {
    %c0_i32 = arith.constant 0 : i32
    %c0_i32_0 = arith.constant 0 : i32
    %c0_i32_1 = arith.constant 0 : i32
    %c0_i32_2 = arith.constant 0 : i32
    return %c0_i32, %c0_i32_0, %c0_i32_1 : i32, i32, i32
  }
  func.func @transform_5(%arg0: i32, %arg1: i32) -> (i32, i32, i32) {
    %c0_i32 = arith.constant 0 : i32
    %c0_i32_0 = arith.constant 0 : i32
    return %arg0, %c0_i32, %arg1 : i32, i32, i32
  }
}

</mosaic_0001>

<bundles_post_ra>
// kernel: tpu_custom_call.1
= control target key start
LH: loop header
LB: loop body
LE: loop exit
PB: predicated region body
PF: predicated region fallthrough
CT: control target
= control target key end

     0   :  { %10 = vsyncpa [#allocation4], 0  ;;  %s1318_s0 = inlined_call_operand.vmem [shape: f32[2,4,256], index: 0, kind: input, shape index: {}]   ;;  %s1319_s1 = inlined_call_operand.vmem [shape: f32[2,2,4,16], index: 1, kind: input, shape index: {}]   ;;  %s1320_s2 = inlined_call_operand.vmem [shape: f32[2,2,4,16], index: 2, kind: input, shape index: {}]   ;;  %s1321_s3 = inlined_call_operand.vmem [shape: f32[8,4], index: 3, kind: input, shape index: {}]   ;;  %s1322_s4 = inlined_call_operand.vmem [shape: f32[9,8,1], index: 4, kind: input, shape index: {}]   ;;  %s1323_s5 = inlined_call_operand.hbm [shape: f32[2,8,256], index: 5, kind: output, shape index: {}]  }
   0x1   :  { %12 = vsyncpa [#allocation4 + $0x1], 0  ;;  %s1073_s18 = smov 0   ;;  %s1075_s19 = smov 0  }
   0x2   :  { %s1077_s20 = smov 0   ;;  %s1079_s21 = smov 0  }
   0x3   :  { %s1081_s22 = smov 0   ;;  %s1083_s23 = smov 0  }
   0x4   :  { %s1085_s24 = smov 0   ;;  %s1087_s25 = smov 0  }
   0x5 LB: > { %s812_s26 = sadd.s32 4294967295, %s1031_s25   ;;  %s813_s27 = sadd.s32 4294967294, %s1031_s25   ;;  %s1031_s25 = sphi %s1087_s25, %s18_s25   ;;  %s1027_s24 = sphi %s1085_s24, %s1338_s24   ;;  %s1023_s23 = sphi %s1083_s23, %s1337_s23   ;;  %s1019_s22 = sphi %s1081_s22, %s1336_s22   ;;  %s1015_s21 = sphi %s1079_s21, %s1335_s21   ;;  %s1011_s20 = sphi %s1077_s20, %s1334_s20   ;;  %s1007_s19 = sphi %s1075_s19, %s1333_s19   ;;  %s1003_s18 = sphi %s1073_s18, %s1332_s18  }
   0x6   : > { %s27_s28 = sadd.s32 1, %s1023_s23  ;;  %s30_s29 = sadd.s32 1, %s1027_s24 }
   0x7   : > { %p28_p0 = scmp.ge.s32.totalorder %s27_s28, 2  ;;  %p175_p1 = scmp.ne.s32.totalorder %s1011_s20, %s1007_s19 }
   0x8   : > { %p176_p2 = scmp.eq.s32.totalorder %s812_s26, 3  ;;  %p181_p5 = scmp.ne.s32.totalorder %s1007_s19, %s1003_s18 }
   0x9   : > { %s1340_s28 = smov (%p28_p0, %s27_s28), 0  ;;  %s1342_s29 = smov (!%p28_p0, %s30_s29), %s1027_s24 }
   0xa   : > { %1326 = sst [smem:[#allocation6_spill]] %s1340_s28  ;;  %s161_s30 = ssub.s32 %s1023_s23, %s1340_s28 }
   0xb   : > { %p1124_p3 = por %p176_p2, %p175_p1  ;;  %p32_p4 = scmp.ge.s32.totalorder %s1342_s29, 2 }
   0xc   : > { %p182_p6 = scmp.eq.s32.totalorder %s813_s27, 3  ;;  %p816_p7 = scmp.ge.s32.totalorder %s1031_s25, 1 }
   0xd   : > { %s1344_s29 = smov (%p32_p4, %s1342_s29), 0  ;;  %p239_p9 = scmp.lt.s32.totalorder %s1031_s25, 5 }
   0xe   : > { %1328 = sst [smem:[#allocation7_spill]] %s1344_s29  ;;  %p1133_p8 = por %p182_p6, %p181_p5 }
   0xf   : > { %s160_s8 = ssub.s32 %s1027_s24, %s1344_s29  ;;  %s165_s9 = sadd.s32 1, %s1011_s20 }
  0x10   : > { %s162_s10 = sor.u32 %s161_s30, %s160_s8  ;;  %p240_p10 = pnand %p816_p7, %p239_p9 }
  0x11   : > { %p163_p11 = scmp.eq.s32.totalorder %s162_s10, 0  ;;  %p286_p12 = scmp.lt.s32.totalorder (!%p240_p10), %s1019_s22, 1  ;;  %vm313_vm0 = vcmask (!%p240_p10), 125952   ;;  %v1033_v0 = vmov (!%p240_p10), 0.0   ;;  %v1035_v4 = vmov (!%p240_p10), 0   ;;  %v835_v5 = vld [vmem:[%s1322_s4 + $0x10] sm:$0xff] (!%p240_p10)  ;;  %v406_v13 = vlaneseq (!%p240_p10) }
  0x12   : > { %243 = sbr.rel (%p240_p10) target bundleno = 1217 (0x4c1), region = 40  ;;  %p288_p13 = scmp.lt.s32.totalorder (!%p240_p10), %s1015_s21, 1  ;;  %399 = vmatprep.mubr.f32.mxu0 (!%p240_p10), %v1033_v0  ;;  %925 = vset.pattern.permute.xlu1 (!%p240_p10), %v1035_v4  ;;  %v834_v6 = vld [vmem:[%s1322_s4 + $0x8] sm:$0xff] (!%p240_p10)  ;;  %v526_v7 = vld [vmem:[%s1322_s4] sm:$0xff] (!%p240_p10)  ;;  %vm320_vm1 = vcmask (!%p240_p10), 257152   ;;  %vm330_vm2 = vcmask (!%p240_p10), 1043456  }
  0x13   : > { %s1142_s11 = scalar_select %p163_p11, %s1011_s20, %s165_s9  }
  0x14   : > { %924 = vset.pattern.permute.xlu0 (!%p240_p10), %v1035_v4  ;;  %558 = vperm.xlu1 (!%p240_p10), %925, %v835_v5   ;;  %v838_v8 = vld [vmem:[%s1322_s4 + $0x40] sm:$0xff] (!%p240_p10)  ;;  %vm326_vm3 = vcmask (!%p240_p10), 31744   ;;  %v407_v14 = vand.u32 (!%p240_p10), 127, %v406_v13  ;;  %s1036_s8 = smov (!%p240_p10), 32   ;;  %v837_v25 = vld [vmem:[%s1322_s4 + $0x38] sm:$0xff] (!%p240_p10)  ;;  %vm445_vm8 = vcmask (!%p240_p10), 1047808  }
  0x15   : > { %v323_v12 = vld [vmem:[%s1321_s3] sm:$0xff] (!%p240_p10)  ;;  %vm470_vm9 = vcmask (!%p240_p10), 7168   ;;  %v836_v41 = vld [vmem:[%s1322_s4 + $0x30] sm:$0xff] (!%p240_p10)  ;;  %vm458_vm10 = vcmask (!%p240_p10), 252928   ;;  %vm520_vm11 = vcmask (!%p240_p10), 244736   ;;  %s1040_s29 = smov (!%p240_p10), 97  }
  0x16   : > { %v408_v15 = vadd.s32 (!%p240_p10), 128, %v407_v14  ;;  %v413_v16 = vand.u32 (!%p240_p10), 15, %v407_v14  ;;  %vm580_vm12 = vcmask (!%p240_p10), 793600   ;;  %s1041_s10 = smov (!%p240_p10), 15   ;;  %vm596_vm13 = vcmask (!%p240_p10), 121856  }
  0x18   : > { %v420_v17 = vand.u32 (!%p240_p10), 15, %v408_v15  ;;  %vm439_vm4 = vcmp.le.s32.totalorder (!%p240_p10), %v413_v16, 14  ;;  %vm433_vm6 = vcmp.ge.s32.totalorder (!%p240_p10), %v413_v16, 1 }
  0x19   : > { %s287_s12 = scalar_select %p286_p12, %s1019_s22, 1  ;;  %v829_v18 = vsel %vm439_vm4, 1.0, %v1033_v0  ;;  %v827_v26 = vsel %vm433_vm6, 1.0, %v1033_v0 }
  0x1a   : > { %s289_s13 = scalar_select %p288_p13, %s1015_s21, 1  ;;  %vm440_vm5 = vcmp.le.s32.totalorder %v420_v17, 14  ;;  %vm434_vm7 = vcmp.ge.s32.totalorder %v420_v17, 1 }
  0x1b   : > { %s818_s14 = sshll.u32 %s287_s12, 1  ;;  %s1034_s12 = smov 16   ;;  %v830_v19 = vsel %vm440_vm5, 1.0, %v1033_v0  ;;  %v828_v27 = vsel %vm434_vm7, 1.0, %v1033_v0 }
  0x1c   : > { %s291_s15 = sadd.s32 %s818_s14, %s289_s13  ;;  %v926_v23 = vpack.i.bf16 %v830_v19, %v829_v18  ;;  %v931_v28 = vpack.i.bf16 %v828_v27, %v827_v26  ;;  %s1038_s13 = smov 31   ;;  %v831_v27 = vld [vmem:[%s1322_s4 + $0x18] sm:$0xff] }
  0x1d   : > { %s819_s16 = sshll.u32 %s291_s15, 2  ;;  %s1039_s14 = smov 30  }
  0x1e   : > { %s301_s27 = scalar_lea.vmem %s1319_s1, %s819_s16  ;;  %s293_s9 = scalar_lea.vmem %s1318_s0, %s819_s16 }
  0x1f   : > { %v315_v1 = vld [vmem:[%s301_s27] sm:$0xf]  ;;  %s309_s28 = scalar_lea.vmem %s1320_s2, %s819_s16 }
  0x20   : > { %v310_v2 = vld [vmem:[%s293_s9] sm:$0xf]  ;;  %317 = vrot.lane.b32.xlu0 %v315_v1, %s1034_s12  ;;  %s1037_s9 = smov 1  }
  0x21   : > { %311 = vst [vmem:[#allocation2] sm:$0xf] %v310_v2  ;;  %v312_v3 = vld [vmem:[%s309_s28] sm:$0xf] }
  0x22   : > { %314 = vst.msk [vmem:[#allocation2 + $0x4] sm:$0xf] %vm313_vm0, %v312_v3 }
  0x24   : > { %538 = vperm.xlu0 %924, %v834_v6  }
  0x28   : > { %529 = vperm.xlu0 %924, %v526_v7  }
  0x2c   : > { %635 = vperm.xlu0 %924, %v838_v8  }
  0x92   : > { %v318_v9 = vpop.permute.xlu0 %317 }
  0x93   : > { %321 = vst.msk [vmem:[#allocation2 + $0x4] sm:$0xf] %vm320_vm1, %v318_v9  ;;  %v559_v30 = vpop.permute.xlu1 %558 }
  0x9a   : > { %v322_v10 = vld [vmem:[#allocation2] sm:$0xff] }
  0x9b   : > { %v325_v11 = vcombine.high %v322_v10, %v322_v10 }
  0x9d   : > { %824 = vmatprep.subr.msk.mxu0 %vm330_vm2, %v325_v11 }
  0x9e   : > { %825 = vmatpush1.msk.msra.mxu0 %vm330_vm2, %v322_v10 }
  0x9f   : > { %826 = vmatmul.mubr.msk.f32.vlgmr.msra.gmra.mrb[0].mxu0 %vm326_vm3, %v323_v12 }
  0xa3   : > { %v539_v20 = vpop.permute.xlu0 %538 }
  0xa7   : > { %v530_v45 = vpop.permute.xlu0 %529 }
  0xab   : > { %v636_v48 = vpop.permute.xlu0 %635 }
 0x172   : > { %v1172_v21 = vpop.f32.mrb[0].mxu0 }
 0x173   : > { %446 = vrot.lane.b32.xlu1 %v1172_v21, %s1036_s8  ;;  %v1176_v22 = vpop.f32.mrb[1].mxu0  ;;  %v541_v29 = vmul.f32 %v539_v20, %v1172_v21 }
 0x174   : > { %v542_v24 = vmul.f32 %v539_v20, %v1176_v22 }
 0x177   : > { %927 = vrot.lane.b32.xlu1 %v926_v23, %s1037_s9  ;;  %v832_v23 = vld [vmem:[%s1322_s4 + $0x20] sm:$0xff] }
 0x17b   : > { %615 = vperm.xlu1 %925, %v837_v25  }
 0x17f   : > { %932 = vrot.lane.b32.xlu1 %v931_v28, %s1038_s13 }
 0x183   : > { %545 = vrot.lane.b32.xlu1 %v541_v29, %s1038_s13 }
 0x1e5   : > { %v447_v31 = vpop.permute.xlu1 %446 }
 0x1e6   : > { %v448_v32 = vsel %vm445_vm8, %v447_v31, %v1176_v22 }
 0x1e7   : > { %449 = vrot.lane.b32.xlu0 %v448_v32, %s1036_s8 }
 0x1e9   : > { %v928_v33 = vpop.permute.xlu1 %927 }
 0x1ea   : > { %v930_v34 = vunpack.i.h.bf16 %v928_v33  ;;  %v929_v35 = vunpack.i.l.bf16 %v928_v33 }
 0x1eb   : > { %547 = vrot.lane.b32.xlu0 %v542_v24, %s1038_s13  ;;  %v833_v24 = vld [vmem:[%s1322_s4 + $0x28] sm:$0xff] }
 0x1ec   : > { %v471_v36 = vsel %vm470_vm9, %v929_v35, %v930_v34  ;;  %v1190_v37 = vmul.f32 %v929_v35, %v1172_v21 }
 0x1ed   : > { %v1192_v38 = vmul.f32 %v471_v36, %v448_v32 }
 0x1ee   : > { %v561_v39 = vmul.f32 %v559_v30, %v1190_v37  ;;  %v638_v3 = vmul.f32 %v636_v48, %v1190_v37 }
 0x1ef   : > { %v562_v40 = vmul.f32 %v559_v30, %v1192_v38  ;;  %v639_v4 = vmul.f32 %v636_v48, %v1192_v38 }
 0x1f0   : > { %565 = vrot.lane.b32.xlu1 %v561_v39, %s1039_s14 }
 0x1f1   : > { %567 = vrot.lane.b32.xlu0 %v562_v40, %s1039_s14 }
 0x1f4   : > { %606 = vperm.xlu1 %925, %v836_v41  }
 0x1fa   : > { %v616_v42 = vpop.permute.xlu1 %615 }
 0x1fb   : > { %v618_v43 = vmul.f32 %v616_v42, %v1172_v21  ;;  %v619_v44 = vmul.f32 %v616_v42, %v1176_v22 }
 0x1fd   : > { %624 = vrot.lane.b32.xlu1 %v619_v44, %s1038_s13  ;;  %622 = vrot.lane.b32.xlu0 %v618_v43, %s1038_s13 }
 0x1fe   : > { %v933_v46 = vpop.permute.xlu1 %932 }
 0x1ff   : > { %v935_v47 = vunpack.i.h.bf16 %v933_v46  ;;  %v934_v49 = vunpack.i.l.bf16 %v933_v46 }
 0x201   : > { %v459_v50 = vsel %vm458_vm10, %v934_v49, %v935_v47  ;;  %v1206_v51 = vmul.f32 %v934_v49, %v448_v32 }
 0x202   : > { %v546_v57 = vpop.permute.xlu1 %545 }
 0x203   : > { %v532_v55 = vmul.f32 %v530_v45, %v1206_v51 }
 0x205   : > { %v552_v60 = vadd.f32 %v546_v57, %v532_v55 }
 0x259   : > { %v450_v52 = vpop.permute.xlu0 %449 }
 0x25a   : > { %v451_v53 = vsel %vm445_vm8, %v450_v52, %v447_v31 }
 0x25b   : > { %v1209_v54 = vmul.f32 %v459_v50, %v451_v53 }
 0x25d   : > { %v548_v56 = vpop.permute.xlu0 %547  ;;  %v533_v58 = vmul.f32 %v530_v45, %v1209_v54 }
 0x25e   : > { %v549_v59 = vsel %vm458_vm10, %v546_v57, %v548_v56 }
 0x25f   : > { %v553_v62 = vadd.f32 %v549_v59, %v533_v58 }
 0x262   : > { %v566_v61 = vpop.permute.xlu1 %565 }
 0x263   : > { %v572_v63 = vadd.f32 %v566_v61, %v552_v60  ;;  %v568_v0 = vpop.permute.xlu0 %567 }
 0x264   : > { %v569_v1 = vsel %vm520_vm11, %v566_v61, %v568_v0 }
 0x265   : > { %v573_v2 = vadd.f32 %v569_v1, %v553_v62  ;;  %576 = vrot.lane.b32.xlu0 %v572_v63, %s1040_s29 }
 0x267   : > { %578 = vrot.lane.b32.xlu1 %v573_v2, %s1040_s29 }
 0x269   : > { %642 = vrot.lane.b32.xlu0 %v638_v3, %s1039_s14 }
 0x26b   : > { %644 = vrot.lane.b32.xlu1 %v639_v4, %s1039_s14 }
 0x26f   : > { %v623_v6 = vpop.permute.xlu0 %622 }
 0x273   : > { %v607_v5 = vpop.permute.xlu1 %606 }
 0x274   : > { %v609_v8 = vmul.f32 %v607_v5, %v1206_v51  ;;  %v610_v14 = vmul.f32 %v607_v5, %v1209_v54 }
 0x276   : > { %v629_v13 = vadd.f32 %v623_v6, %v609_v8 }
 0x277   : > { %v625_v7 = vpop.permute.xlu1 %624 }
 0x278   : > { %v626_v11 = vsel %vm458_vm10, %v623_v6, %v625_v7 }
 0x279   : > { %v630_v17 = vadd.f32 %v626_v11, %v610_v14 }
 0x2d7   : > { %v577_v9 = vpop.permute.xlu0 %576 }
 0x2d9   : > { %v579_v10 = vpop.permute.xlu1 %578 }
 0x2da   : > { %v581_v12 = vsel %vm580_vm12, %v577_v9, %v579_v10 }
 0x2db   : > { %584 = vrot.lane.b32.xlu0 %v581_v12, %s1036_s8  ;;  %v643_v15 = vpop.permute.xlu0 %642 }
 0x2dc   : > { %v649_v16 = vadd.f32 %v643_v15, %v629_v13 }
 0x2dd   : > { %v645_v18 = vpop.permute.xlu1 %644 }
 0x2de   : > { %v646_v19 = vsel %vm520_vm11, %v643_v15, %v645_v18  ;;  %653 = vrot.lane.b32.xlu1 %v649_v16, %s1040_s29 }
 0x2df   : > { %v650_v20 = vadd.f32 %v646_v19, %v630_v17 }
 0x2e1   : > { %655 = vrot.lane.b32.xlu0 %v650_v20, %s1040_s29 }
 0x2e2   : > { %489 = vperm.xlu1 %925, %v832_v23  }
 0x2e5   : > { %509 = vperm.xlu0 %924, %v833_v24  }
 0x34d   : > { %v585_v25 = vpop.permute.xlu0 %584 }
 0x34e   : > { %v586_v26 = vsel %vm445_vm8, %v585_v25, %v579_v10 }
 0x34f   : > { %587 = vrot.lane.b32.xlu1 %v586_v26, %s1036_s8 }
 0x350   : > { %v654_v28 = vpop.permute.xlu1 %653 }
 0x353   : > { %480 = vperm.xlu1 %925, %v831_v27   ;;  %v656_v29 = vpop.permute.xlu0 %655 }
 0x354   : > { %v657_v30 = vsel %vm580_vm12, %v654_v28, %v656_v29 }
 0x355   : > { %660 = vrot.lane.b32.xlu0 %v657_v30, %s1036_s8  ;;  %s283_s8 = sand.u32 1, %s1007_s19  }
 0x356   : > { %s817_s12 = sshll.u32 %s283_s8, 3 }
 0x357   : > { %s285_s17 = scalar_lea.vmem [#allocation3], %s817_s12 }
 0x358   : > { %s698_s16 = sshll.u32 %s285_s17, 4  ;;  %s1266_s16 = int_to_ptr.vmem [resolvable:$true] %s698_s16 }
 0x361   : > { %v490_v31 = vpop.permute.xlu1 %489 }
 0x362   : > { %v492_v32 = vmul.f32 %v490_v31, %v1172_v21  ;;  %v493_v33 = vmul.f32 %v490_v31, %v1176_v22 }
 0x364   : > { %498 = vrot.lane.b32.xlu1 %v493_v33, %s1038_s13  ;;  %496 = vrot.lane.b32.xlu0 %v492_v32, %s1038_s13  ;;  %v510_v34 = vpop.permute.xlu0 %509  ;;  %s840_s13 = sshll.u32 %s1019_s22, 1  ;;  %s683_s22 = scalar_lea.sflag [#allocation4], %s283_s8 }
 0x365   : > { %v512_v35 = vmul.f32 %v510_v34, %v1190_v37  ;;  %v513_v36 = vmul.f32 %v510_v34, %v1192_v38 }
 0x368   : > { %518 = vrot.lane.b32.xlu1 %v513_v36, %s1039_s14  ;;  %516 = vrot.lane.b32.xlu0 %v512_v35, %s1039_s14  ;;  %s694_s14 = sadd.s32 %s1015_s21, %s840_s13  ;;  %s937_s21 = scalar_lea.vmem %s1266_s16, 128 }
 0x369   : > { %s841_s15 = sshll.u32 %s694_s14, 7  ;;  %p938_p0 = scmp.ne.s32.totalorder %s1266_s16, %s937_s21 }
 0x36a   : > { %s1264_s27 = scalar_lea.hbm %s1323_s5, %s841_s15 }
 0x36b   : > { %p939_p1 = pnand %p938_p0, %p1124_p3 }
 0x36c   : > { %592 = vrot.lane.b32.xlu0 %v586_v26, %s1041_s10 }
 0x36d   : > { %p940_p2 = pneg %p939_p1 }
 0x370   : > { %664 = vrot.lane.b32.xlu0 %v657_v30, %s1041_s10 }
 0x3c1   : > { %v588_v39 = vpop.permute.xlu1 %587 }
 0x3c2   : > { %v589_v21 = vsel %vm445_vm8, %v588_v39, %v585_v25 }
 0x3c3   : > { %594 = vrot.lane.b32.xlu1 %v589_v21, %s1041_s10 }
 0x3c7   : > { %v661_v22 = vpop.permute.xlu0 %660 }
 0x3c8   : > { %v662_v40 = vsel %vm445_vm8, %v661_v22, %v656_v29 }
 0x3c9   : > { %666 = vrot.lane.b32.xlu1 %v662_v40, %s1041_s10 }
 0x3d2   : > { %v481_v41 = vpop.permute.xlu1 %480 }
 0x3d3   : > { %v484_v37 = vmul.f32 %v481_v41, %v1209_v54  ;;  %v483_v47 = vmul.f32 %v481_v41, %v1206_v51 }
 0x3d6   : > { %v499_v42 = vpop.permute.xlu1 %498  ;;  %v497_v38 = vpop.permute.xlu0 %496 }
 0x3d7   : > { %v500_v43 = vsel %vm458_vm10, %v497_v38, %v499_v42  ;;  %v503_v50 = vadd.f32 %v497_v38, %v483_v47 }
 0x3d8   : > { %v504_v44 = vadd.f32 %v500_v43, %v484_v37 }
 0x3da   : > { %v519_v45 = vpop.permute.xlu1 %518  ;;  %v517_v46 = vpop.permute.xlu0 %516 }
 0x3db   : > { %v521_v48 = vsel %vm520_vm11, %v517_v46, %v519_v45  ;;  %v524_v53 = vadd.f32 %v517_v46, %v503_v50 }
 0x3dc   : > { %v525_v49 = vadd.f32 %v521_v48, %v504_v44 }
 0x3de   : > { %v593_v52 = vpop.permute.xlu0 %592 }
 0x3df   : > { %v600_v55 = vadd.f32 %v593_v52, %v524_v53 }
 0x3e2   : > { %v665_v54 = vpop.permute.xlu0 %664 }
 0x3e3   : > { %v671_v56 = vadd.f32 %v665_v54, %v600_v55 }
 0x3e5   : > { %675 = vrot.lane.b32.xlu0 %v671_v56, %s1040_s29 }
 0x435   : > { %v595_v57 = vpop.permute.xlu1 %594 }
 0x436   : > { %v597_v58 = vsel %vm596_vm13, %v593_v52, %v595_v57 }
 0x437   : > { %v601_v59 = vadd.f32 %v597_v58, %v525_v49 }
 0x43b   : > { %v667_v60 = vpop.permute.xlu1 %666 }
 0x43c   : > { %v668_v51 = vsel %vm596_vm13, %v665_v54, %v667_v60 }
 0x43d   : > { %v672_v61 = vadd.f32 %v668_v51, %v601_v59 }
 0x43f   : > { %677 = vrot.lane.b32.xlu1 %v672_v61, %s1040_s29  ;;  %s1042_s29 = smov [#allocation3]  }
 0x440   : > { %s941_s30 = sshll.u32 %s1042_s29, 4  ;;  %s942_s30 = int_to_ptr.vmem [resolvable:$false] %s941_s30 }
 0x441   : > { %s943_s9 = scalar_lea.vmem %s942_s30, 256  ;;  %p944_p4 = scmp.lt.s32.totalorder %s1266_s16, %s942_s30 }
 0x442   : > { %p945_p5 = scmp.lt.s32.totalorder %s943_s9, %s937_s21 }
 0x444   : > { %p946_p6 = por %p945_p5, %p944_p4 }
 0x446   : > { %p947_p7 = pnand %p946_p6, %p940_p2 }
 0x457   : > { %v676_v62 = vpop.permute.xlu0 %675 }
 0x4b1   : > { %v678_v63 = vpop.permute.xlu1 %677 }
 0x4b2   : > { %v679_v0 = vsel %vm580_vm12, %v676_v62, %v678_v63 }
 0x4b3   : > { %681 = vst [vmem:[%s285_s17] sm:$0xff] %v679_v0 }
 0x4b4   : > { %950 = shalt.err (!%p947_p7)
}
 0x4b5   : > { %s951_s10 = scalar_lea.hbm %s1264_s27, 128  ;;  %s955_s13 = scalar_lea.hbm %s1323_s5, 512 }
 0x4b6   : > { %p952_p9 = scmp.ne.s32.totalorder %s1264_s27, %s951_s10  ;;  %p956_p12 = scmp.lt.u32.totalorder %s1264_s27, %s1323_s5 }
 0x4b7   : > { %p957_p13 = scmp.lt.u32.totalorder %s955_s13, %s951_s10  ;;  %p959_p1 = scmp.lt.u32.totalorder %s951_s10, %s1264_s27 }
 0x4b8   : > { %p953_p10 = pnand %p952_p9, %p1124_p3 }
 0x4b9   : > { %p958_p0 = por %p957_p13, %p956_p12 }
 0x4ba   : > { %p954_p11 = pneg %p953_p10 }
 0x4bb   : > { %p960_p2 = por %p959_p1, %p958_p0 }
 0x4bd   : > { %p961_p4 = pnand %p960_p2, %p954_p11 }
 0x4bf   : > { %964 = shalt.err (!%p961_p4)
}
 0x4c0   : > { %844 = dma.vmem_to_hbm [thread:$0]  (%p1124_p3), %s1266_s16, 128, %s1264_s27, %s683_s22  }
 0x4c1 PF: > { %p850_p5 = scmp.ge.s32.totalorder %s1031_s25, 2  ;;  %s710_s17 = sand.u32 1, %s1003_s18  }
 0x4c2   : > { %s711_s28 = scalar_lea.sflag [#allocation4], %s710_s17 }
 0x4c3   : > { %p847_p6 = pnand %p850_p5, %p1133_p8 }
 0x4c5   : > { %998 = dma.done.wait (!%p847_p6), %s711_s28, 128  }
 0x4c6   : > { %1000 = vsyncadd (!%p847_p6), %s711_s28, 4294967168  ;;  %s18_s25 = sadd.s32 1, %s1031_s25   ;;  %s1330_s6 = sld [smem:[#allocation6_spill]] }
 0x4c7   : > { %p15_p7 = scmp.ge.s32.totalorder %s18_s25, 6   ;;  %s1331_s16 = sld [smem:[#allocation7_spill]] }
 0x4c8   : > { %s1332_s18 = smov %s1007_s19  ;;  %s1333_s19 = smov %s1011_s20 }
 0x4c9   : > { %s1334_s20 = smov %s1142_s11  ;;  %s1335_s21 = smov %s1023_s23 }
 0x4ca   : > { %s1336_s22 = smov %s1027_s24  ;;  %17 = sbr.rel (!%p15_p7) target bundleno = 5 (0x5), region = 89 }
 0x4cc   : > { %s1337_s23 = smov %s1330_s6 }
 0x4cd   : > { %s1338_s24 = smov %s1331_s16 }
 0x4d1   :  { %716 = vsyncpa [#allocation4], 1 }
 0x4d2   :  { %718 = vsyncpa [#allocation4 + $0x1], 1 }

</bundles_post_ra>
